<compile_context>
chip_gen: v6e
topology: v6e:2x2x1
jax: 0.10.0
libtpu: 0.0.40
codegen_flags: <defaults>
</compile_context>

<pallas_src>
import functools

import jax
import jax.numpy as jnp
from jax.experimental import pallas as pl
from jax.experimental.pallas import tpu as pltpu


def _largest_divisor_leq(n, cap):
    d = max(1, min(n, int(cap)))
    while n % d != 0:
        d -= 1
    return d


# ----------------------------------------------------------------------------
# Triplet loss kernel
# Layout: embeddings are [P, N, C] (parts, batch, channels); C maps to lanes.
# Grid = (P,): one part per grid step. The full [N, N] distance matrix is built
# once per part (one MXU matmul + norms), ap/an (with sentinels and the margin
# folded into ap) are stored in VMEM scratch, and the N^3 hinge sum/count runs
# as an in-kernel fori_loop over anchor chunks with bounded live vregs.
# ----------------------------------------------------------------------------
def _triplet_kernel(margin, chunk, n_batch,
                    emb_ref, match_ref, out_ref, apm_scr, an_scr):
    n = n_batch
    n_chunks = n // chunk

    # ---- once per part: full pairwise distance matrix ----
    x = emb_ref[0]                                        # [N, C] native dtype (MXU input)
    xf = x.astype(jnp.float32)
    x2 = xf * xf
    sq_col = jnp.sum(x2, axis=-1, keepdims=True)          # [N, 1]
    ones_row = jnp.ones((1, x2.shape[-1]), jnp.float32)
    sq_row = jnp.einsum('kc,nc->kn', ones_row, x2,
                        preferred_element_type=jnp.float32)          # [1, N] (lane-resident)
    gram = jnp.einsum('ac,nc->an', x, x,
                      preferred_element_type=jnp.float32)            # [N, N]
    dist = jnp.sqrt(jnp.maximum(sq_col + sq_row - 2.0 * gram, 0.0))  # [N, N]

    same = match_ref[...] > 0.5                           # [N, N]
    big = jnp.float32(1e9)
    apm = jnp.where(same, dist, -big) + margin            # positives keep dist (+margin)
    an = jnp.where(same, big, dist)                       # negatives keep dist
    apm_scr[...] = apm
    an_scr[...] = an

    # hard_loss via separability: max_{p,n} relu(ap + m - an) = relu(max_p ap + m - min_n an)
    hard = jnp.max(jnp.maximum(jnp.max(apm, axis=-1, keepdims=True)
                               - jnp.min(an, axis=-1, keepdims=True), 0.0))
    mean_dist = jnp.sum(dist) * (1.0 / float(n * n))

    # ---- anchor-chunked N^3 hinge sum / count ----
    def body(i, carry):
        s, c = carry
        a0 = pl.multiple_of(i * chunk, chunk)
        ap_c = apm_scr[pl.ds(a0, chunk), :]               # [chunk, N]
        an_c = an_scr[pl.ds(a0, chunk), :]                # [chunk, N]
        # [chunk (anchor), N (positive -> sublanes), N (negative -> lanes)]
        diff = ap_c[:, :, None] - an_c[:, None, :]
        s = s + jnp.sum(jnp.maximum(diff, 0.0))
        c = c + jnp.sum(jnp.where(diff > 0.0, 1.0, 0.0))
        return s, c

    init = (jnp.zeros((1, 1), jnp.float32), jnp.zeros((1, 1), jnp.float32))
    if n_chunks == 1:
        loss_sum, loss_num = body(0, init)
    else:
        loss_sum, loss_num = jax.lax.fori_loop(0, n_chunks, body, init,
                                               unroll=bool(n_chunks <= 4))

    loss_avg = jnp.where(loss_num == 0.0, 0.0, loss_sum / (loss_num + 1e-9))

    col = jax.lax.broadcasted_iota(jnp.int32, (1, 4), 1)
    row = (jnp.where(col == 0, loss_avg, 0.0)
           + jnp.where(col == 1, hard, 0.0)
           + jnp.where(col == 2, loss_num, 0.0)
           + jnp.where(col == 3, mean_dist, 0.0))
    out_ref[...] = row.reshape(1, 1, 4)


def triplet_loss_pallas(embeddings_ncp, labels, margin, *, anchor_chunk=None):
    """embeddings_ncp: [N, C, P] (PyTorch layout); labels: [N] int.

    Returns (loss_avg[P], hard_loss[P], loss_num[P], mean_dist[P])."""
    x = jnp.transpose(embeddings_ncp, (2, 0, 1))          # [P, N, C], original dtype
    P, N, C = x.shape
    matches = (labels[:, None] == labels[None, :]).astype(jnp.float32)   # [N, N]

    if anchor_chunk is None:
        # bound the [chunk, N, N] f32 hinge temporaries to ~64 vregs (256 KiB)
        anchor_chunk = max(1, (64 * 1024) // max(N * N, 1))
    chunk = _largest_divisor_leq(N, anchor_chunk)

    kern = functools.partial(_triplet_kernel, float(margin), int(chunk), int(N))
    out = pl.pallas_call(
        kern,
        out_shape=jax.ShapeDtypeStruct((P, 1, 4), jnp.float32),
        grid=(P,),
        in_specs=[pl.BlockSpec((1, N, C), lambda p: (p, 0, 0)),
                  pl.BlockSpec((N, N), lambda p: (0, 0))],
        out_specs=pl.BlockSpec((1, 1, 4), lambda p: (p, 0, 0)),
        scratch_shapes=[pltpu.VMEM((N, N), jnp.float32),
                        pltpu.VMEM((N, N), jnp.float32)],
        compiler_params=pltpu.CompilerParams(
            dimension_semantics=("parallel",)),
    )(x, matches)
    stats = out[:, 0, :]                                  # [P, 4]
    return stats[:, 0], stats[:, 1], stats[:, 2], stats[:, 3]


# ----------------------------------------------------------------------------
# Cross-entropy (with label smoothing) kernel
# Layout: logits are [P, N, C] (parts, batch, classes); C maps to lanes.
# Grid = (P, N // tile_n): the part axis is "parallel" (megacore on v7x) and
# writes a per-part partial sum to a (P, 1) output; the row-tile axis is the
# reduction. No dense one-hot — label column selected via iota == label.
# ----------------------------------------------------------------------------
def _ce_kernel(scale, eps, num_classes,
               logits_ref, labels_ref, out_ref, acc_ref):
    i = pl.program_id(1)

    @pl.when(i == 0)
    def _init():
        acc_ref[...] = jnp.zeros_like(acc_ref)

    z = logits_ref[0].astype(jnp.float32) * scale                    # [tn, C]
    zmax = jnp.max(z, axis=-1, keepdims=True)
    zs = z - zmax
    lse = jnp.log(jnp.sum(jnp.exp(zs), axis=-1, keepdims=True))      # [tn, 1]

    cls = jax.lax.broadcasted_iota(jnp.int32, z.shape, 1)            # [tn, C]
    lbl = labels_ref[...]                                            # [tn, 1] int32
    z_lbl = jnp.sum(jnp.where(cls == lbl, zs, 0.0),
                    axis=-1, keepdims=True)                          # [tn, 1]

    if eps == 0.0:
        loss_rows = lse - z_lbl
    else:
        sum_zs = jnp.sum(zs, axis=-1, keepdims=True)                 # [tn, 1]
        loss_rows = ((1.0 - eps) * (lse - z_lbl)
                     + (eps / num_classes) * (num_classes * lse - sum_zs))

    acc_ref[...] += jnp.sum(loss_rows)

    @pl.when(i == pl.num_programs(1) - 1)
    def _finalize():
        out_ref[...] = acc_ref[...]


def cross_entropy_pallas(logits_ncp, labels, scale, eps, *, row_tile=None):
    """logits_ncp: [N, C, P] (PyTorch layout); labels: [N]. Returns scalar CE."""
    N, C, P = logits_ncp.shape
    z = jnp.transpose(logits_ncp, (2, 0, 1))              # [P, N, C], original dtype
    lbl = labels.astype(jnp.int32).reshape(N, 1)

    if row_tile is None:
        bytes_per_row = C * z.dtype.itemsize
        budget = 8 << 20                   # double-buffered logits block budget (v7x-safe)
        row_tile = N
        if 2 * N * bytes_per_row > budget:
            for cand in (512, 256, 128, 64, 32, 16, 8):
                if cand < N and N % cand == 0 and 2 * cand * bytes_per_row <= budget:
                    row_tile = cand
                    break
    tn = row_tile
    if N % tn != 0 or (tn % 8 != 0 and tn != N):
        tn = N
    n_row_tiles = N // tn

    kern = functools.partial(_ce_kernel, float(scale), float(eps), float(C))
    part_sums = pl.pallas_call(
        kern,
        out_shape=jax.ShapeDtypeStruct((P, 1), jnp.float32),
        grid=(P, n_row_tiles),
        in_specs=[pl.BlockSpec((1, tn, C), lambda p, i: (p, i, 0)),
                  pl.BlockSpec((tn, 1), lambda p, i: (i, 0))],
        out_specs=pl.BlockSpec((1, 1), lambda p, i: (p, 0)),
        scratch_shapes=[pltpu.VMEM((1, 1), jnp.float32)],
        compiler_params=pltpu.CompilerParams(
            dimension_semantics=("parallel", "arbitrary")),
    )(z, lbl)
    return jnp.sum(part_sums) / float(N * P)


# ----------------------------------------------------------------------------
# Loss aggregator (glue; the heavy math is in the Pallas kernels above)
# ----------------------------------------------------------------------------
class LossAggregator:
    def __init__(self, loss_cfg):
        self.loss_cfg = loss_cfg  # no trainable parameters in these losses

    def __call__(self, training_feats):
        loss_sum = jnp.asarray(0.0, jnp.float32)
        loss_info = {}
        for k, v in training_feats.items():
            if k == 'triplet':
                cfg = self.loss_cfg['triplet']
                loss_avg, hard, num, mdist = triplet_loss_pallas(
                    v['embeddings'], v['labels'], cfg['margin'])
                loss_info['scalar/triplet/loss'] = loss_avg
                loss_info['scalar/triplet/hard_loss'] = hard
                loss_info['scalar/triplet/loss_num'] = num
                loss_info['scalar/triplet/mean_dist'] = mdist
                loss_sum = loss_sum + jnp.mean(loss_avg) * cfg['loss_term_weight']
            elif k == 'softmax':
                cfg = self.loss_cfg['softmax']
                ce = cross_entropy_pallas(
                    v['logits'], v['labels'], cfg['scale'], cfg['eps'])
                loss_info['scalar/softmax/loss'] = ce
                loss_sum = loss_sum + ce * cfg['loss_term_weight']
            else:
                raise ValueError(
                    'The key %s in -Training-Feat- should be stated in your '
                    'loss_cfg as log_prefix.' % k)
        return loss_sum, loss_info


if __name__ == "__main__":
    # Small, deterministic example shapes (consistent with OpenGait training feats)
    N, C_EMB, P, N_CLS = 8, 32, 4, 16

    key = jax.random.PRNGKey(0)
    k_emb, k_log = jax.random.split(key)
    embeddings = jax.random.normal(k_emb, (N, C_EMB, P), dtype=jnp.float32)  # [n, c, p]
    logits = jax.random.normal(k_log, (N, N_CLS, P), dtype=jnp.float32)      # [n, class, p]
    # balanced labels (2 samples per class), as required by the triplet view semantics
    labels = jnp.array([0, 0, 1, 1, 2, 2, 3, 3], dtype=jnp.int32)

    loss_cfg = {
        'triplet': {'margin': 0.2, 'loss_term_weight': 1.0},
        'softmax': {'scale': 16.0, 'eps': 0.1, 'loss_term_weight': 1.0},
    }

    aggregator = LossAggregator(loss_cfg)
    training_feats = {
        'triplet': {'embeddings': embeddings, 'labels': labels},
        'softmax': {'logits': logits, 'labels': labels},
    }

    loss_sum, loss_info = aggregator(training_feats)
    loss_sum = jax.block_until_ready(loss_sum)
    jax.block_until_ready(loss_info)

    assert jnp.isfinite(loss_sum), "loss_sum is not finite"
    print("KERNEL_OK")
</pallas_src>

<mosaic_0001>
module attributes {stable_mosaic.version = 11 : i64} {
  func.func @_triplet_kernel(%arg0: i32, %arg1: memref<1x8x32xf32, #tpu.memory_space<vmem>>, %arg2: memref<8x8xf32, #tpu.memory_space<vmem>>, %arg3: memref<1x1x4xf32, #tpu.memory_space<vmem>>, %arg4: memref<8x8xf32, #tpu.memory_space<vmem>>, %arg5: memref<8x8xf32, #tpu.memory_space<vmem>>) attributes {dimension_semantics = [#tpu.dimension_semantics<parallel>], iteration_bounds = array<i64: 4>, scalar_prefetch = 0 : i64, scratch_operands = 2 : i64, tpu.core_type = #tpu.core_type<tc>, window_params = [{transform_indices = @transform_0, window_bounds = array<i64: 1, 8, 32>}, {pipeline_mode = #tpu.pipeline_mode<synchronous>, transform_indices = @transform_1, window_bounds = array<i64: 8, 8>}, {transform_indices = @transform_2, window_bounds = array<i64: 1, 1, 4>}]} {
    %c0 = arith.constant 0 : index
    %c0_0 = arith.constant 0 : index
    %c0_1 = arith.constant 0 : index
    %0 = vector.load %arg1[%c0, %c0_0, %c0_1] : memref<1x8x32xf32, #tpu.memory_space<vmem>>, vector<1x8x32xf32>
    %1 = vector.shape_cast %0 : vector<1x8x32xf32> to vector<8x32xf32>
    %2 = arith.mulf %1, %1 : vector<8x32xf32>
    %cst = arith.constant dense<0.000000e+00> : vector<8xf32>
    %3 = vector.multi_reduction <add>, %2, %cst [1] : vector<8x32xf32> to vector<8xf32>
    %4 = vector.shape_cast %3 : vector<8xf32> to vector<8x1xf32>
    %cst_2 = arith.constant 1.000000e+00 : f32
    %5 = vector.broadcast %cst_2 : f32 to vector<1x32xf32>
    "tpu.trace_start"() <{level = 10 : i32, message = "kc,nc->kn"}> : () -> ()
    %cst_3 = arith.constant dense<0.000000e+00> : vector<1x8xf32>
    %6 = tpu.matmul %5, %2, %cst_3 {dimension_numbers = #tpu.dot_dimension_numbers<[1], [1], [0], [0], [0, 0, 1, 0], [], []>} : vector<1x32xf32>, vector<8x32xf32>, vector<1x8xf32> -> vector<1x8xf32>
    "tpu.trace_stop"() : () -> ()
    "tpu.trace_start"() <{level = 10 : i32, message = "ac,nc->an"}> : () -> ()
    %cst_4 = arith.constant dense<0.000000e+00> : vector<8x8xf32>
    %7 = tpu.matmul %1, %1, %cst_4 {dimension_numbers = #tpu.dot_dimension_numbers<[1], [1], [0], [0], [0, 0, 1, 0], [], []>} : vector<8x32xf32>, vector<8x32xf32>, vector<8x8xf32> -> vector<8x8xf32>
    "tpu.trace_stop"() : () -> ()
    %8 = vector.broadcast %4 : vector<8x1xf32> to vector<8x8xf32>
    %9 = vector.broadcast %6 : vector<1x8xf32> to vector<8x8xf32>
    %10 = arith.addf %8, %9 : vector<8x8xf32>
    %cst_5 = arith.constant 2.000000e+00 : f32
    %11 = vector.broadcast %cst_5 : f32 to vector<8x8xf32>
    %12 = arith.mulf %11, %7 : vector<8x8xf32>
    %13 = arith.subf %10, %12 : vector<8x8xf32>
    %cst_6 = arith.constant 0.000000e+00 : f32
    %14 = vector.broadcast %cst_6 : f32 to vector<8x8xf32>
    %15 = arith.maximumf %13, %14 : vector<8x8xf32>
    %16 = math.sqrt %15 : vector<8x8xf32>
    %c0_7 = arith.constant 0 : index
    %c0_8 = arith.constant 0 : index
    %17 = vector.load %arg2[%c0_7, %c0_8] : memref<8x8xf32, #tpu.memory_space<vmem>>, vector<8x8xf32>
    %cst_9 = arith.constant 5.000000e-01 : f32
    %18 = vector.broadcast %cst_9 : f32 to vector<8x8xf32>
    %19 = arith.cmpf ogt, %17, %18 : vector<8x8xf32>
    %cst_10 = arith.constant 0.000000e+00 : f32
    %cst_11 = arith.constant 1.000000e+09 : f32
    %20 = arith.subf %cst_10, %cst_11 : f32
    %21 = vector.broadcast %20 : f32 to vector<8x8xf32>
    %22 = arith.select %19, %16, %21 : vector<8x8xi1>, vector<8x8xf32>
    %cst_12 = arith.constant 2.000000e-01 : f32
    %23 = vector.broadcast %cst_12 : f32 to vector<8x8xf32>
    %24 = arith.addf %22, %23 : vector<8x8xf32>
    %cst_13 = arith.constant 1.000000e+09 : f32
    %25 = vector.broadcast %cst_13 : f32 to vector<8x8xf32>
    %26 = arith.select %19, %25, %16 : vector<8x8xi1>, vector<8x8xf32>
    %c0_14 = arith.constant 0 : index
    %c0_15 = arith.constant 0 : index
    %27 = vector.load %arg4[%c0_14, %c0_15] : memref<8x8xf32, #tpu.memory_space<vmem>>, vector<8x8xf32>
    tpu.vector_store %arg4[%c0_14, %c0_15], %24 {strides = array<i32>} : memref<8x8xf32, #tpu.memory_space<vmem>>, vector<8x8xf32>,
    %c0_16 = arith.constant 0 : index
    %c0_17 = arith.constant 0 : index
    %28 = vector.load %arg5[%c0_16, %c0_17] : memref<8x8xf32, #tpu.memory_space<vmem>>, vector<8x8xf32>
    tpu.vector_store %arg5[%c0_16, %c0_17], %26 {strides = array<i32>} : memref<8x8xf32, #tpu.memory_space<vmem>>, vector<8x8xf32>,
    %cst_18 = arith.constant dense<0xFF800000> : vector<8xf32>
    %29 = vector.multi_reduction <maximumf>, %24, %cst_18 [1] : vector<8x8xf32> to vector<8xf32>
    %30 = vector.shape_cast %29 : vector<8xf32> to vector<8x1xf32>
    %cst_19 = arith.constant dense<0x7F800000> : vector<8xf32>
    %31 = vector.multi_reduction <minimumf>, %26, %cst_19 [1] : vector<8x8xf32> to vector<8xf32>
    %32 = vector.shape_cast %31 : vector<8xf32> to vector<8x1xf32>
    %33 = arith.subf %30, %32 : vector<8x1xf32>
    %cst_20 = arith.constant 0.000000e+00 : f32
    %34 = vector.broadcast %cst_20 : f32 to vector<8x1xf32>
    %35 = arith.maximumf %33, %34 : vector<8x1xf32>
    %36 = vector.shape_cast %35 : vector<8x1xf32> to vector<1x8x1xf32>
    %cst_21 = arith.constant dense<0xFF800000> : vector<1xf32>
    %37 = vector.multi_reduction <maximumf>, %36, %cst_21 [1, 2] : vector<1x8x1xf32> to vector<1xf32>
    %38 = vector.shape_cast %37 : vector<1xf32> to vector<1x1x1xf32>
    %39 = vector.extract %38[0, 0, 0] : f32 from vector<1x1x1xf32>
    %40 = vector.shape_cast %16 : vector<8x8xf32> to vector<1x8x8xf32>
    %cst_22 = arith.constant dense<0.000000e+00> : vector<1xf32>
    %41 = vector.multi_reduction <add>, %40, %cst_22 [1, 2] : vector<1x8x8xf32> to vector<1xf32>
    %42 = vector.shape_cast %41 : vector<1xf32> to vector<1x1x1xf32>
    %43 = vector.extract %42[0, 0, 0] : f32 from vector<1x1x1xf32>
    %cst_23 = arith.constant 1.562500e-02 : f32
    %44 = arith.mulf %43, %cst_23 : f32
    %cst_24 = arith.constant 0.000000e+00 : f32
    %45 = vector.broadcast %cst_24 : f32 to vector<1x1xf32>
    %cst_25 = arith.constant 0.000000e+00 : f32
    %46 = vector.broadcast %cst_25 : f32 to vector<1x1xf32>
    %c0_i32 = arith.constant 0 : i32
    %47 = tpu.assume_multiple %c0_i32, 8 : i32
    %48 = arith.index_cast %47 : i32 to index
    %c0_26 = arith.constant 0 : index
    %49 = vector.load %arg4[%48, %c0_26] : memref<8x8xf32, #tpu.memory_space<vmem>>, vector<8x8xf32>
    %50 = arith.index_cast %47 : i32 to index
    %c0_27 = arith.constant 0 : index
    %51 = vector.load %arg5[%50, %c0_27] : memref<8x8xf32, #tpu.memory_space<vmem>>, vector<8x8xf32>
    %52 = vector.shape_cast %49 : vector<8x8xf32> to vector<8x8x1xf32>
    %53 = vector.shape_cast %51 : vector<8x8xf32> to vector<8x1x8xf32>
    %54 = vector.broadcast %52 : vector<8x8x1xf32> to vector<8x8x8xf32>
    %55 = vector.broadcast %53 : vector<8x1x8xf32> to vector<8x8x8xf32>
    %56 = arith.subf %54, %55 : vector<8x8x8xf32>
    %cst_28 = arith.constant 0.000000e+00 : f32
    %57 = vector.broadcast %cst_28 : f32 to vector<8x8x8xf32>
    %58 = arith.maximumf %56, %57 : vector<8x8x8xf32>
    %59 = vector.shape_cast %58 : vector<8x8x8xf32> to vector<1x8x8x8xf32>
    %cst_29 = arith.constant dense<0.000000e+00> : vector<1xf32>
    %60 = vector.multi_reduction <add>, %59, %cst_29 [1, 2, 3] : vector<1x8x8x8xf32> to vector<1xf32>
    %61 = vector.shape_cast %60 : vector<1xf32> to vector<1x1x1x1xf32>
    %62 = vector.extract %61[0, 0, 0, 0] : f32 from vector<1x1x1x1xf32>
    %63 = vector.broadcast %62 : f32 to vector<1x1xf32>
    %64 = arith.addf %45, %63 : vector<1x1xf32>
    %cst_30 = arith.constant 0.000000e+00 : f32
    %65 = vector.broadcast %cst_30 : f32 to vector<8x8x8xf32>
    %66 = arith.cmpf ogt, %56, %65 : vector<8x8x8xf32>
    %cst_31 = arith.constant 1.000000e+00 : f32
    %cst_32 = arith.constant 0.000000e+00 : f32
    %67 = vector.broadcast %cst_31 : f32 to vector<8x8x8xf32>
    %68 = vector.broadcast %cst_32 : f32 to vector<8x8x8xf32>
    %69 = arith.select %66, %67, %68 : vector<8x8x8xi1>, vector<8x8x8xf32>
    %70 = vector.shape_cast %69 : vector<8x8x8xf32> to vector<1x8x8x8xf32>
    %cst_33 = arith.constant dense<0.000000e+00> : vector<1xf32>
    %71 = vector.multi_reduction <add>, %70, %cst_33 [1, 2, 3] : vector<1x8x8x8xf32> to vector<1xf32>
    %72 = vector.shape_cast %71 : vector<1xf32> to vector<1x1x1x1xf32>
    %73 = vector.extract %72[0, 0, 0, 0] : f32 from vector<1x1x1x1xf32>
    %74 = vector.broadcast %73 : f32 to vector<1x1xf32>
    %75 = arith.addf %46, %74 : vector<1x1xf32>
    %cst_34 = arith.constant 0.000000e+00 : f32
    %76 = vector.broadcast %cst_34 : f32 to vector<1x1xf32>
    %77 = arith.cmpf oeq, %75, %76 : vector<1x1xf32>
    %cst_35 = arith.constant 9.99999971E-10 : f32
    %78 = vector.broadcast %cst_35 : f32 to vector<1x1xf32>
    %79 = arith.addf %75, %78 : vector<1x1xf32>
    %80 = arith.divf %64, %79 : vector<1x1xf32>
    %cst_36 = arith.constant 0.000000e+00 : f32
    %81 = vector.broadcast %cst_36 : f32 to vector<1x1xf32>
    %82 = arith.select %77, %81, %80 : vector<1x1xi1>, vector<1x1xf32>
    %83 = tpu.iota {dimensions = array<i32: 1>} : vector<1x4xi32>
    %c0_i32_37 = arith.constant 0 : i32
    %84 = vector.broadcast %c0_i32_37 : i32 to vector<1x4xi32>
    %85 = arith.cmpi eq, %83, %84 : vector<1x4xi32>
    %cst_38 = arith.constant 0.000000e+00 : f32
    %86 = vector.shape_cast %82 : vector<1x1xf32> to vector<1x1xf32>
    %87 = vector.broadcast %86 : vector<1x1xf32> to vector<1x4xf32>
    %88 = vector.broadcast %cst_38 : f32 to vector<1x4xf32>
    %89 = arith.select %85, %87, %88 : vector<1x4xi1>, vector<1x4xf32>
    %c1_i32 = arith.constant 1 : i32
    %90 = vector.broadcast %c1_i32 : i32 to vector<1x4xi32>
    %91 = arith.cmpi eq, %83, %90 : vector<1x4xi32>
    %cst_39 = arith.constant 0.000000e+00 : f32
    %92 = vector.broadcast %39 : f32 to vector<1x4xf32>
    %93 = vector.broadcast %cst_39 : f32 to vector<1x4xf32>
    %94 = arith.select %91, %92, %93 : vector<1x4xi1>, vector<1x4xf32>
    %95 = arith.addf %89, %94 : vector<1x4xf32>
    %c2_i32 = arith.constant 2 : i32
    %96 = vector.broadcast %c2_i32 : i32 to vector<1x4xi32>
    %97 = arith.cmpi eq, %83, %96 : vector<1x4xi32>
    %cst_40 = arith.constant 0.000000e+00 : f32
    %98 = vector.shape_cast %75 : vector<1x1xf32> to vector<1x1xf32>
    %99 = vector.broadcast %98 : vector<1x1xf32> to vector<1x4xf32>
    %100 = vector.broadcast %cst_40 : f32 to vector<1x4xf32>
    %101 = arith.select %97, %99, %100 : vector<1x4xi1>, vector<1x4xf32>
    %102 = arith.addf %95, %101 : vector<1x4xf32>
    %c3_i32 = arith.constant 3 : i32
    %103 = vector.broadcast %c3_i32 : i32 to vector<1x4xi32>
    %104 = arith.cmpi eq, %83, %103 : vector<1x4xi32>
    %cst_41 = arith.constant 0.000000e+00 : f32
    %105 = vector.broadcast %44 : f32 to vector<1x4xf32>
    %106 = vector.broadcast %cst_41 : f32 to vector<1x4xf32>
    %107 = arith.select %104, %105, %106 : vector<1x4xi1>, vector<1x4xf32>
    %108 = arith.addf %102, %107 : vector<1x4xf32>
    %109 = vector.shape_cast %108 : vector<1x4xf32> to vector<1x1x4xf32>
    %c0_42 = arith.constant 0 : index
    %c0_43 = arith.constant 0 : index
    %c0_44 = arith.constant 0 : index
    %110 = vector.load %arg3[%c0_42, %c0_43, %c0_44] : memref<1x1x4xf32, #tpu.memory_space<vmem>>, vector<1x1x4xf32>
    tpu.vector_store %arg3[%c0_42, %c0_43, %c0_44], %109 {strides = array<i32>} : memref<1x1x4xf32, #tpu.memory_space<vmem>>, vector<1x1x4xf32>,
    return
  }
  func.func @transform_0(%arg0: i32) -> (i32, i32, i32) {
    %c0_i32 = arith.constant 0 : i32
    %c0_i32_0 = arith.constant 0 : i32
    %c0_i32_1 = arith.constant 0 : i32
    return %arg0, %c0_i32, %c0_i32_0 : i32, i32, i32
  }
  func.func @transform_1(%arg0: i32) -> (i32, i32) {
    %c0_i32 = arith.constant 0 : i32
    %c0_i32_0 = arith.constant 0 : i32
    %c0_i32_1 = arith.constant 0 : i32
    return %c0_i32, %c0_i32_0 : i32, i32
  }
  func.func @transform_2(%arg0: i32) -> (i32, i32, i32) {
    %c0_i32 = arith.constant 0 : i32
    %c0_i32_0 = arith.constant 0 : i32
    %c0_i32_1 = arith.constant 0 : i32
    return %arg0, %c0_i32, %c0_i32_0 : i32, i32, i32
  }
}

</mosaic_0001>

<bundles_post_ra>
// kernel: tpu_custom_call.1
= control target key start
LH: loop header
LB: loop body
LE: loop exit
PB: predicated region body
PF: predicated region fallthrough
CT: control target
= control target key end

     0   :  { %7 = vsyncpa [#allocation5], 0  ;;  %s1210_s0 = inlined_call_operand.hbm [shape: f32[4,8,32], index: 0, kind: input, shape index: {}]   ;;  %s1211_s1 = inlined_call_operand.hbm [shape: f32[8,8], index: 1, kind: input, shape index: {}]   ;;  %s1212_s2 = inlined_call_operand.hbm [shape: f32[4,1,4], index: 2, kind: output, shape index: {}]  }
   0x1   :  { %9 = vsyncpa [#allocation5 + $0x1], 0 }
   0x2   :  { %10 = vsyncpa [#allocation8], 0 }
   0x3   :  { %11 = vsyncpa [#allocation6], 0 }
   0x4   :  { %13 = vsyncpa [#allocation6 + $0x1], 0  ;;  %s968_s9 = smov 0   ;;  %s970_s10 = smov 0  }
   0x5   :  { %s972_s11 = smov 0   ;;  %s974_s12 = smov 0  }
   0x6 LB: > { %s989_s13 = sadd.s32 4294967295, %s944_s12   ;;  %s718_s14 = sadd.s32 4294967294, %s944_s12   ;;  %s944_s12 = sphi %s974_s12, %s1234_s12   ;;  %s940_s11 = sphi %s972_s11, %s1233_s11   ;;  %s936_s10 = sphi %s970_s10, %s1232_s10   ;;  %s932_s9 = sphi %s968_s9, %s1231_s9  }
   0x7   : > { %p39_p0 = scmp.ne.s32.totalorder %s936_s10, %s932_s9  ;;  %p1213_p1 = scmp.eq.s32.totalorder %s989_s13, 0 }
   0x8   : > { %p90_p3 = scmp.eq.s32.totalorder %s718_s14, 3  ;;  %p719_p5 = scmp.ge.s32.totalorder %s944_s12, 1 }
   0x9   : > { %p998_p4 = por %p1213_p1, %p39_p0  ;;  %p97_p7 = scmp.lt.s32.totalorder %s944_s12, 5 }
   0xa   : > { %p1003_p6 = por %p90_p3, %p39_p0  ;;  %s946_s18 = smov [#allocation7]  }
   0xb   : > { %s1217_s15 = scalar_select %p998_p4, 1, 0 }
   0xc   : > { %s1218_s16 = scalar_select %p1003_p6, 1, 0 }
   0xd   : > { %p1008_p8 = pnand %p719_p5, %p97_p7  ;;  %s110_s19 = sshll.u32 %s946_s18, 4  ;;  %s111_s19 = int_to_ptr.vmem [resolvable:$true] %s110_s19 }
   0xe   : > { %s1015_s20 = sadd.s32 1, %s944_s12   ;;  %s26_s24 = sadd.s32 1, %s940_s11 }
   0xf   : > { %s1219_s17 = scalar_select %p1008_p8, 1, 0 }
  0x10   : > { %p764_p9 = pneg %p1008_p8  ;;  %s23_s22 = ssub.s32 %s944_s12, %s1015_s20 }
  0x11   : > { %p1025_p11 = scmp.eq.s32.totalorder %s23_s22, 0  ;;  %p33_p12 = scmp.ne.s32.totalorder %s940_s11, %s936_s10 }
  0x12   : > { %p1019_p10 = pnand %p764_p9, %p1213_p1  ;;  %s833_s25 = scalar_lea.vmem %s111_s19, 128 }
  0x13   : > { %p834_p0 = scmp.ne.s32.totalorder %s111_s19, %s833_s25  ;;  %p841_p7 = scmp.lt.s32.totalorder %s111_s19, %s111_s19 }
  0x14   : > { %p824_p13 = pneg %p1019_p10  ;;  %p842_p2 = scmp.lt.s32.totalorder %s833_s25, %s833_s25 }
  0x16   : > { %p836_p3 = pnand %p834_p0, %p824_p13  ;;  %p843_p9 = por %p842_p2, %p841_p7 }
  0x18   : > { %p837_p5 = pneg %p836_p3 }
  0x1a   : > { %p844_p1 = pnand %p843_p9, %p837_p5 }
  0x1c   : > { %847 = shalt.err (!%p844_p1)
}
  0x1d   : > { %767 = dma.hbm_to_vmem [thread:$0]  (!%p1019_p10), %s1211_s1, 128, %s111_s19, [#allocation8]  }
  0x1e   : > { %s1042_s28 = scalar_select %p1025_p11, %s940_s11, %s26_s24  }
  0x1f   : > { %p34_p1 = scmp.eq.s32.totalorder %s944_s12, 0  ;;  %p1222_p2 = scmp.eq.s32.totalorder %s989_s13, 3 }
  0x20   : > { %p777_p0 = scmp.lt.s32.totalorder %s944_s12, 4  ;;  %s121_s30 = sand.u32 1, %s940_s11  }
  0x21   : > { %p1050_p13 = por %p1222_p2, %p33_p12  ;;  %p35_p3 = por %p34_p1, %p33_p12 }
  0x22   : > { %s722_s3 = sshll.u32 %s121_s30, 3  ;;  %s723_s4 = sshll.u32 %s944_s12, 7 }
  0x23   : > { %s1223_s29 = scalar_select %p1050_p13, 1, 0 }
  0x24   : > { %s1063_s7 = scalar_lea.hbm %s1210_s0, %s723_s4  ;;  %s125_s8 = scalar_lea.vmem [#allocation4], %s722_s3 }
  0x25   : > { %s132_s14 = sshll.u32 %s125_s8, 4  ;;  %p1065_p10 = pnand %p777_p0, %p35_p3  ;;  %s133_s14 = int_to_ptr.vmem [resolvable:$true] %s132_s14 }
  0x26   : > { %s122_s19 = scalar_lea.sflag [#allocation5], %s121_s30  ;;  %s848_s21 = scalar_lea.hbm %s1063_s7, 128 }
  0x27   : > { %p849_p11 = scmp.ne.s32.totalorder %s1063_s7, %s848_s21  ;;  %p850_p12 = pneg %p1065_p10 }
  0x28   : > { %s853_s24 = scalar_lea.hbm %s1210_s0, 512  ;;  %p854_p9 = scmp.lt.s32.totalorder %s1063_s7, %s1210_s0 }
  0x29   : > { %p851_p5 = pnand %p850_p12, %p849_p11  ;;  %p855_p1 = scmp.lt.s32.totalorder %s853_s24, %s848_s21 }
  0x2b   : > { %p852_p7 = pneg %p851_p5  ;;  %p856_p2 = por %p855_p1, %p854_p9 }
  0x2d   : > { %p857_p0 = pnand %p856_p2, %p852_p7 }
  0x2f   : > { %860 = shalt.err (!%p857_p0)
}
  0x30   : > { %s861_s27 = scalar_lea.vmem %s133_s14, 128  ;;  %s947_s30 = smov [#allocation4]  }
  0x31   : > { %p862_p3 = scmp.ne.s32.totalorder %s133_s14, %s861_s27  ;;  %s866_s3 = sshll.u32 %s947_s30, 4  ;;  %s867_s3 = int_to_ptr.vmem [resolvable:$false] %s866_s3 }
  0x32   : > { %s868_s4 = scalar_lea.vmem %s867_s3, 256  ;;  %p869_p11 = scmp.lt.s32.totalorder %s133_s14, %s867_s3 }
  0x33   : > { %p864_p6 = pnand %p862_p3, %p850_p12  ;;  %p870_p5 = scmp.lt.s32.totalorder %s868_s4, %s861_s27 }
  0x35   : > { %p865_p13 = pneg %p864_p6  ;;  %p871_p4 = por %p870_p5, %p869_p11 }
  0x37   : > { %p872_p8 = pnand %p871_p4, %p865_p13 }
  0x39   : > { %875 = shalt.err (!%p872_p8)
}
  0x3a   : > { %771 = dma.hbm_to_vmem [thread:$0]  (!%p1065_p10), %s1063_s7, 128, %s133_s14, %s122_s19  }
  0x3b   : > { %p1225_p7 = scmp.ne.s32.totalorder %s1219_s17, 0 }
  0x3c   : > { %s1086_s5 = sand.u32 (!%p1225_p7), 1, %s936_s10   ;;  %p1226_p6 = scmp.ne.s32.totalorder (!%p1225_p7), %s1217_s15, 0 }
  0x3d   : > { %141 = sbr.rel (%p1225_p7) target bundleno = 695 (0x2b7), region = 28  ;;  %s725_s6 = sshll.u32 (!%p1225_p7), %s1086_s5, 3 }
  0x3e   : > { %s144_s8 = scalar_lea.sflag (!%p1225_p7), [#allocation5], %s1086_s5  ;;  %s147_s21 = scalar_lea.vmem (!%p1225_p7), [#allocation4], %s725_s6 }
  0x42   : > { %919 = dma.done.wait (%p1226_p6), %s144_s8, 128  }
  0x43   : > { %921 = vsyncadd (%p1226_p6), %s144_s8, 4294967168  ;;  %p1227_p4 = scmp.eq.s32.totalorder %s989_s13, 0 }
  0x45   : > { %923 = dma.done.wait (%p1227_p4), [#allocation8], 128   ;;  %p1228_p8 = pmov %p1227_p4 }
  0x46   : > { %v948_v0 = vmov 0.0   ;;  %vm949_vm0 = vmmov 0   ;;  %vm173_vm1 = vcmask 261120   ;;  %v171_v1 = vld [vmem:[%s147_s21] sm:$0xff]  ;;  %v950_v4 = vmov 1.0   ;;  %v341_v18 = vld [vmem:[#allocation7] sm:$0xff] }
  0x47   : > { %925 = vsyncadd (%p1228_p8), [#allocation8], 4294967168  ;;  %738 = vmatprep.subr.mxu0 %v948_v0  ;;  %743 = vmatprep.subr.mxu1 %v948_v0  ;;  %v172_v2 = vmul.f32 %v171_v1, %v171_v1  ;;  %v326_v5 = vlaneseq  ;;  %vm342_vm2 = vcmp.gt.f32.partialorder %v341_v18, 0.5  ;;  %v951_v22 = vmov 1966171168   ;;  %s731_s19 = sshll.u32 %s989_s13, 4 }
  0x48   : > { %740 = vmatprep.mubr.msk.f32.mxu0 %vm949_vm0, %v948_v0  ;;  %745 = vmatprep.mubr.msk.f32.mxu1 %vm949_vm0, %v948_v0  ;;  %v436_v23 = vunpack.c.l.s4 %v951_v22  ;;  %vm346_vm4 = vcmask 64512   ;;  %s170_s22 = scalar_lea.vmem [#allocation9], %s1086_s5  ;;  %s640_s26 = scalar_lea.hbm %s1212_s2, %s731_s19 }
  0x49   : > { %744 = vmatpush3.xpose.msk.msra.mxu1 %vm173_vm1, %v171_v1  ;;  %739 = vmatpush3.xpose.msk.msra.mxu0 %vm173_vm1, %v172_v2  ;;  %v174_v3 = vsel %vm173_vm1, %v172_v2, 0.0  ;;  %v1103_v6 = vshrl.u32 %v326_v5, 7  ;;  %s642_s23 = sshll.u32 %s170_s22, 4  ;;  %s630_s27 = scalar_lea.sflag [#allocation6], %s1086_s5  ;;  %s643_s23 = int_to_ptr.vmem [resolvable:$true] %s642_s23 }
  0x4a   : > { %175 = vadd.xlane.f32.xlu0 %v174_v3  ;;  %v437_v29 = vunpack.c.0.s8 %v436_v23  ;;  %s876_s30 = scalar_lea.vmem %s643_s23, 16  ;;  %p1229_p10 = scmp.ne.s32.totalorder %s1223_s29, 0 }
  0x4b   : > { %v1106_v7 = vsub.s32 0, %v1103_v6  ;;  %v386_v31 = vsub.s32 1, %v1103_v6  ;;  %v393_v36 = vsub.s32 2, %v1103_v6  ;;  %v400_v43 = vsub.s32 3, %v1103_v6  ;;  %p877_p13 = scmp.ne.s32.totalorder %s643_s23, %s876_s30  ;;  %s952_s3 = smov [#allocation9]  }
  0x4c   : > { %746 = vmatmul.mubr.msk.f32.vlgmr.msra.gmra.mxu1 %vm173_vm1, %v171_v1  ;;  %741 = vmatmul.mubr.msk.f32.vlgmr.msra.gmra.mxu0 %vm173_vm1, %v950_v4  ;;  %v440_v30 = vsub.s32 %v437_v29, %v1103_v6  ;;  %v407_v56 = vsub.s32 4, %v1103_v6  ;;  %v414_v63 = vsub.s32 5, %v1103_v6  ;;  %v421_v2 = vsub.s32 6, %v1103_v6  ;;  %s880_s13 = sshll.u32 %s952_s3, 4  ;;  %s881_s13 = int_to_ptr.vmem [resolvable:$false] %s880_s13 }
  0x4d   : > { %v428_v4 = vsub.s32 7, %v1103_v6  ;;  %p878_p12 = pnand %p877_p13, %p1229_p10  ;;  %s882_s4 = scalar_lea.vmem %s881_s13, 32 }
  0x4e   : > { %p883_p1 = scmp.lt.s32.totalorder %s643_s23, %s881_s13  ;;  %p884_p2 = scmp.lt.s32.totalorder %s882_s4, %s876_s30 }
  0x4f   : > { %p879_p9 = pneg %p878_p12 }
  0x50   : > { %p885_p0 = por %p884_p2, %p883_p1 }
  0x52   : > { %p886_p3 = pnand %p885_p0, %p879_p9 }
  0xd3   : > { %v176_v9 = vpop.xlane.xlu0 %175 }
 0x10c   : > { %v322_v8 = vpop.f32.mrf.mxu1  ;;  %v249_v10 = vpop.f32.mrf.mxu0 }
 0x10d   : > { %v329_v12 = vrot.slane %v249_v10, %v1106_v7  ;;  %v331_v13 = vmul.f32 2.0, %v322_v8 }
 0x10e   : > { %v747_v11 = vpop.f32.mrf.mxu1  ;;  %v742_v14 = vpop.f32.mrf.mxu0 }
 0x10f   : > { %v330_v15 = vadd.f32 %v329_v12, %v176_v9 }
 0x111   : > { %v332_v16 = vsub.f32 %v330_v15, %v331_v13 }
 0x113   : > { %v333_v17 = vmax.f32 %v332_v16, 0.0 }
 0x115   : > { %818 = vrsqrt.f32 %v333_v17  ;;  %vm336_vm3 = vcmp.eq.f32.partialorder %v333_v17, inf  ;;  %v339_v21 = vand.u32 2147483648, %v333_v17  ;;  %vm338_vm5 = vcmp.eq.f32.partialorder %v333_v17, 0.0 }
 0x122   : > { %v819_v19 = vpop.eup %818 }
 0x123   : > { %v335_v20 = vmul.f32 %v819_v19, %v333_v17 }
 0x125   : > { %v337_v24 = vsel %vm336_vm3, %v333_v17, %v335_v20  ;;  %vm627_vm3 = vcmask 24576  }
 0x126   : > { %v340_v25 = vsel %vm338_vm5, %v339_v21, %v337_v24 }
 0x127   : > { %v343_v26 = vsel %vm342_vm2, %v340_v25, -1e+09  ;;  %v345_v27 = vsel %vm342_vm2, 1e+09, %v340_v25  ;;  %v364_v10 = vsel %vm346_vm4, %v340_v25, 0.0 }
 0x128   : > { %v344_v28 = vadd.f32 0.2, %v343_v26  ;;  %348 = vst.msk [vmem:[#allocation3] sm:$0xff] %vm346_vm4, %v345_v27  ;;  %v352_v11 = vsel %vm346_vm4, %v345_v27, inf }
 0x12a   : > { %347 = vst.msk [vmem:[#allocation2] sm:$0xff] %vm346_vm4, %v344_v28  ;;  %v349_v9 = vsel %vm346_vm4, %v344_v28, -inf }
 0x12f   : > { %v376_v32 = vld [vmem:[#allocation3] sm:$0xff] }
 0x130   : > { %v441_v33 = vrot.slane %v376_v32, %v440_v30  ;;  %v434_v34 = vcombine.high %v376_v32, %v376_v32 }
 0x131   : > { %v375_v35 = vld [vmem:[#allocation2] sm:$0xff] }
 0x132   : > { %v387_v37 = vrot.slane %v375_v35, %v386_v31  ;;  %v380_v38 = vrot.slane %v375_v35, %v1106_v7  ;;  %v449_v39 = vcombine.high %v441_v33, %v441_v33  ;;  %v457_v40 = vrot.slane %v441_v33, %v440_v30 }
 0x133   : > { %v448_v41 = vrot.slane %v434_v34, %v440_v30  ;;  %v394_v42 = vrot.slane %v375_v35, %v393_v36  ;;  %v401_v55 = vrot.slane %v375_v35, %v400_v43  ;;  %v408_v62 = vrot.slane %v375_v35, %v407_v56 }
 0x134   : > { %389 = vbcast.lane.b32.xlu1 %v387_v37, 256  ;;  %382 = vbcast.lane.b32.xlu0 %v380_v38, 256  ;;  %v471_v44 = vrot.slane %v449_v39, %v440_v30  ;;  %v486_v45 = vrot.slane %v457_v40, %v1106_v7  ;;  %v479_v46 = vcombine.high %v457_v40, %v457_v40 }
 0x135   : > { %v1117_v47 = vrot.slane %v448_v41, %v440_v30  ;;  %v450_v48 = vcombine.high %v448_v41, %v448_v41  ;;  %v415_v1 = vrot.slane %v375_v35, %v414_v63  ;;  %v422_v3 = vrot.slane %v375_v35, %v421_v2 }
 0x136   : > { %v490_v49 = vrot.slane %v471_v44, %v1106_v7  ;;  %v494_v50 = vrot.slane %v479_v46, %v1106_v7  ;;  %v481_v51 = vcombine.high %v471_v44, %v471_v44  ;;  %v429_v8 = vrot.slane %v375_v35, %v428_v4 }
 0x137   : > { %v502_v52 = vrot.slane %v1117_v47, %v1106_v7  ;;  %v1123_v53 = vrot.slane %v450_v48, %v440_v30  ;;  %v480_v54 = vcombine.high %v1117_v47, %v1117_v47 }
 0x138   : > { %396 = vbcast.lane.b32.xlu1 %v394_v42, 256  ;;  %v498_v57 = vrot.slane %v481_v51, %v1106_v7 }
 0x139   : > { %v506_v58 = vrot.slane %v1123_v53, %v1106_v7  ;;  %v1132_v59 = vrot.slane %v480_v54, %v1106_v7  ;;  %v482_v60 = vcombine.high %v1123_v53, %v1123_v53 }
 0x13b   : > { %v1137_v61 = vrot.slane %v482_v60, %v1106_v7 }
 0x13c   : > { %403 = vbcast.lane.b32.xlu1 %v401_v55, 256 }
 0x140   : > { %410 = vbcast.lane.b32.xlu1 %v408_v62, 256 }
 0x144   : > { %417 = vbcast.lane.b32.xlu1 %v415_v1, 256 }
 0x148   : > { %424 = vbcast.lane.b32.xlu1 %v422_v3, 256 }
 0x14c   : > { %431 = vbcast.lane.b32.xlu1 %v429_v8, 256 }
 0x153   : > { %350 = vmax.xlane.f32.xlu0 %v349_v9 }
 0x157   : > { %365 = vadd.xlane.f32.xlu0 %v364_v10 }
 0x170   : > { %353 = vmin.xlane.f32.xlu1 %v352_v11 }
 0x1a6   : > { %v390_v12 = vpop.permute.xlu1 %389  ;;  %v383_v13 = vpop.permute.xlu0 %382 }
 0x1a7   : > { %v524_v14 = vsub.f32 %v390_v12, %v490_v49  ;;  %v523_v15 = vsub.f32 %v383_v13, %v486_v45 }
 0x1a9   : > { %v532_v16 = vmax.f32 %v524_v14, 0.0  ;;  %vm566_vm6 = vcmp.gt.f32.partialorder %v524_v14, 0.0  ;;  %v531_v17 = vmax.f32 %v523_v15, 0.0  ;;  %vm565_vm7 = vcmp.gt.f32.partialorder %v523_v15, 0.0 }
 0x1aa   : > { %v574_v6 = vsel %vm566_vm6, 1.0, %v948_v0  ;;  %v573_v18 = vsel %vm565_vm7, 1.0, %v948_v0  ;;  %v397_v19 = vpop.permute.xlu1 %396 }
 0x1ab   : > { %v540_v20 = vsel %vm346_vm4, %v532_v16, 0.0  ;;  %v582_v21 = vsel %vm346_vm4, %v574_v6, 0.0  ;;  %v539_v22 = vsel %vm346_vm4, %v531_v17, 0.0  ;;  %v581_v23 = vsel %vm346_vm4, %v573_v18, 0.0 }
 0x1ac   : > { %v541_v24 = vadd.f32 %v540_v20, %v539_v22  ;;  %v583_v25 = vadd.f32 %v582_v21, %v581_v23  ;;  %v525_v26 = vsub.f32 %v397_v19, %v494_v50 }
 0x1ae   : > { %v533_v27 = vmax.f32 %v525_v26, 0.0  ;;  %vm567_vm8 = vcmp.gt.f32.partialorder %v525_v26, 0.0  ;;  %v404_v28 = vpop.permute.xlu1 %403 }
 0x1af   : > { %v575_v29 = vsel %vm567_vm8, 1.0, %v948_v0  ;;  %v526_v30 = vsub.f32 %v404_v28, %v498_v57 }
 0x1b0   : > { %v542_v31 = vsel %vm346_vm4, %v533_v27, 0.0  ;;  %v584_v32 = vsel %vm346_vm4, %v575_v29, 0.0 }
 0x1b1   : > { %v543_v33 = vadd.f32 %v542_v31, %v541_v24  ;;  %v585_v34 = vadd.f32 %v584_v32, %v583_v25  ;;  %v534_v35 = vmax.f32 %v526_v30, 0.0  ;;  %vm568_vm9 = vcmp.gt.f32.partialorder %v526_v30, 0.0 }
 0x1b2   : > { %v576_v36 = vsel %vm568_vm9, 1.0, %v948_v0  ;;  %v411_v37 = vpop.permute.xlu1 %410 }
 0x1b3   : > { %v544_v38 = vsel %vm346_vm4, %v534_v35, 0.0  ;;  %v586_v39 = vsel %vm346_vm4, %v576_v36, 0.0  ;;  %v527_v40 = vsub.f32 %v411_v37, %v502_v52 }
 0x1b4   : > { %v545_v41 = vadd.f32 %v544_v38, %v543_v33  ;;  %v587_v42 = vadd.f32 %v586_v39, %v585_v34 }
 0x1b5   : > { %v535_v43 = vmax.f32 %v527_v40, 0.0  ;;  %vm569_vm10 = vcmp.gt.f32.partialorder %v527_v40, 0.0 }
 0x1b6   : > { %v577_v44 = vsel %vm569_vm10, 1.0, %v948_v0  ;;  %v418_v45 = vpop.permute.xlu1 %417 }
 0x1b7   : > { %v546_v46 = vsel %vm346_vm4, %v535_v43, 0.0  ;;  %v588_v47 = vsel %vm346_vm4, %v577_v44, 0.0  ;;  %v528_v48 = vsub.f32 %v418_v45, %v506_v58  ;;  %v613_v43 = vand.u32 127, %v326_v5 }
 0x1b8   : > { %v547_v49 = vadd.f32 %v546_v46, %v545_v41  ;;  %v589_v50 = vadd.f32 %v588_v47, %v587_v42 }
 0x1b9   : > { %v536_v51 = vmax.f32 %v528_v48, 0.0  ;;  %vm570_vm11 = vcmp.gt.f32.partialorder %v528_v48, 0.0  ;;  %vm616_vm14 = vcmp.eq.s32.totalorder %v613_v43, 1  ;;  %vm614_vm15 = vcmp.eq.s32.totalorder %v613_v43, 0 }
 0x1ba   : > { %v578_v52 = vsel %vm570_vm11, 1.0, %v948_v0  ;;  %v425_v54 = vpop.permute.xlu1 %424  ;;  %vm620_vm1 = vcmp.eq.s32.totalorder %v613_v43, 2  ;;  %vm623_vm2 = vcmp.eq.s32.totalorder %v613_v43, 3 }
 0x1bb   : > { %v548_v55 = vsel %vm346_vm4, %v536_v51, 0.0  ;;  %v590_v56 = vsel %vm346_vm4, %v578_v52, 0.0  ;;  %v529_v57 = vsub.f32 %v425_v54, %v1132_v59 }
 0x1bc   : > { %v591_v60 = vadd.f32 %v590_v56, %v589_v50  ;;  %v549_v62 = vadd.f32 %v548_v55, %v547_v49 }
 0x1bd   : > { %v537_v63 = vmax.f32 %v529_v57, 0.0  ;;  %vm571_vm12 = vcmp.gt.f32.partialorder %v529_v57, 0.0 }
 0x1be   : > { %v579_v7 = vsel %vm571_vm12, 1.0, %v948_v0  ;;  %v432_v53 = vpop.permute.xlu1 %431 }
 0x1bf   : > { %v530_v58 = vsub.f32 %v432_v53, %v1137_v61  ;;  %v592_v1 = vsel %vm346_vm4, %v579_v7, 0.0  ;;  %v550_v2 = vsel %vm346_vm4, %v537_v63, 0.0 }
 0x1c0   : > { %v593_v3 = vadd.f32 %v592_v1, %v591_v60  ;;  %v551_v4 = vadd.f32 %v550_v2, %v549_v62 }
 0x1c1   : > { %v538_v8 = vmax.f32 %v530_v58, 0.0  ;;  %vm572_vm13 = vcmp.gt.f32.partialorder %v530_v58, 0.0 }
 0x1c2   : > { %v580_v9 = vsel %vm572_vm13, 1.0, %v948_v0 }
 0x1c3   : > { %v594_v59 = vsel %vm346_vm4, %v580_v9, 0.0  ;;  %v552_v10 = vsel %vm346_vm4, %v538_v8, 0.0 }
 0x1c4   : > { %v595_v11 = vadd.f32 %v594_v59, %v593_v3  ;;  %v553_v12 = vadd.f32 %v552_v10, %v551_v4 }
 0x1c6   : > { %596 = vadd.xlane.f32.xlu1 %v595_v11  ;;  %554 = vadd.xlane.f32.xlu0 %v553_v12 }
 0x1dc   : > { %v351_v13 = vpop.xlane.xlu0 %350 }
 0x1e0   : > { %v366_v61 = vpop.xlane.xlu0 %365 }
 0x1e1   : > { %v367_v14 = vrot.slane %v366_v61, 4 }
 0x1e3   : > { %v368_v15 = vadd.f32 %v367_v14, %v366_v61 }
 0x1e5   : > { %v369_v18 = vrot.slane %v368_v15, 2 }
 0x1e7   : > { %v370_v21 = vadd.f32 %v369_v18, %v368_v15 }
 0x1e9   : > { %v371_v23 = vrot.slane %v370_v21, 1 }
 0x1eb   : > { %v372_v26 = vadd.f32 %v371_v23, %v370_v21 }
 0x1f9   : > { %v354_v16 = vpop.xlane.xlu1 %353 }
 0x1fa   : > { %v355_v17 = vsub.f32 %v351_v13, %v354_v16 }
 0x1fc   : > { %v356_v6 = vmax.f32 %v355_v17, 0.0 }
 0x1fe   : > { %v357_v19 = vrot.slane %v356_v6, 4 }
 0x200   : > { %v358_v20 = vmax.f32 %v356_v6, %v357_v19 }
 0x202   : > { %v359_v0 = vrot.slane %v358_v20, 2 }
 0x204   : > { %v360_v22 = vmax.f32 %v358_v20, %v359_v0 }
 0x206   : > { %v361_v24 = vrot.slane %v360_v22, 1 }
 0x208   : > { %v362_v25 = vmax.f32 %v360_v22, %v361_v24 }
 0x20a   : > { %748 = vpush %v362_v25 }
 0x20b   : > { %750 = vpush %v372_v26 }
 0x23b   : > { %s749_s15 = spop %748 }
 0x23c   : > { %s751_s17 = spop %750  ;;  %v617_v46 = vstv %s749_s15 }
 0x23d   : > { %s374_s18 = smul.f32 0.015625, %s751_s17  ;;  %v618_v49 = vsel %vm616_vm14, %v617_v46, 0.0 }
 0x23f   : > { %v624_v51 = vstv %s374_s18 }
 0x240   : > { %v625_v55 = vsel %vm623_vm2, %v624_v51, 0.0 }
 0x24f   : > { %v597_v27 = vpop.xlane.xlu1 %596  ;;  %v555_v28 = vpop.xlane.xlu0 %554 }
 0x250   : > { %v598_v29 = vrot.slane %v597_v27, 4  ;;  %v556_v30 = vrot.slane %v555_v28, 4 }
 0x252   : > { %v599_v31 = vadd.f32 %v598_v29, %v597_v27  ;;  %v557_v32 = vadd.f32 %v556_v30, %v555_v28 }
 0x254   : > { %v600_v33 = vrot.slane %v599_v31, 2  ;;  %v558_v34 = vrot.slane %v557_v32, 2 }
 0x256   : > { %v601_v35 = vadd.f32 %v600_v33, %v599_v31  ;;  %v559_v36 = vadd.f32 %v558_v34, %v557_v32 }
 0x258   : > { %v560_v37 = vrot.slane %v559_v36, 1  ;;  %v602_v38 = vrot.slane %v601_v35, 1 }
 0x25a   : > { %v561_v39 = vadd.f32 %v560_v37, %v559_v36  ;;  %v603_v40 = vadd.f32 %v602_v38, %v601_v35 }
 0x25c   : > { %752 = vpush %v561_v39 }
 0x25d   : > { %754 = vpush %v603_v40 }
 0x28d   : > { %s753_s7 = spop %752 }
 0x28e   : > { %s755_s14 = spop %754  ;;  %v563_v45 = vstv %s753_s7 }
 0x28f   : > { %v605_v41 = vstv %s755_s14 }
 0x290   : > { %v608_v42 = vadd.f32 1e-09, %v605_v41  ;;  %vm607_vm0 = vcmp.eq.f32.partialorder %v605_v41, 0.0  ;;  %v621_v5 = vsel %vm620_vm1, %v605_v41, 0.0 }
 0x292   : > { %820 = vrcp.f32 %v608_v42 }
 0x29f   : > { %v821_v44 = vpop.eup %820 }
 0x2a0   : > { %v610_v47 = vmul.f32 %v821_v44, %v563_v45 }
 0x2a2   : > { %v611_v48 = vsel %vm607_vm0, 0.0, %v610_v47 }
 0x2a3   : > { %v615_v50 = vsel %vm614_vm15, %v611_v48, 0.0 }
 0x2a4   : > { %v619_v52 = vadd.f32 %v618_v49, %v615_v50 }
 0x2a6   : > { %v622_v54 = vadd.f32 %v621_v5, %v619_v52 }
 0x2a8   : > { %v626_v56 = vadd.f32 %v625_v55, %v622_v54 }
 0x2aa   : > { %628 = vst.msk [vmem:[%s170_s22] sm:$0x1] %vm627_vm3, %v626_v56 }
 0x2ab   : > { %889 = shalt.err (!%p886_p3)
}
 0x2ac   : > { %s890_s6 = scalar_lea.hbm %s640_s26, 16  ;;  %s894_s21 = scalar_lea.hbm %s1212_s2, 64 }
 0x2ad   : > { %p891_p11 = scmp.ne.s32.totalorder %s640_s26, %s890_s6  ;;  %p895_p6 = scmp.lt.s32.totalorder %s640_s26, %s1212_s2 }
 0x2ae   : > { %p896_p4 = scmp.lt.s32.totalorder %s894_s21, %s890_s6 }
 0x2af   : > { %p892_p5 = pnand %p891_p11, %p1229_p10 }
 0x2b0   : > { %p897_p8 = por %p896_p4, %p895_p6 }
 0x2b1   : > { %p893_p7 = pneg %p892_p5 }
 0x2b3   : > { %p898_p13 = pnand %p897_p8, %p893_p7 }
 0x2b5   : > { %901 = shalt.err (!%p898_p13)
}
 0x2b6   : > { %762 = dma.vmem_to_hbm [thread:$0]  (%p1229_p10), %s643_s23, 16, %s640_s26, %s630_s27  }
 0x2b7 PF: > { %p779_p12 = scmp.ge.s32.totalorder %s944_s12, 2  ;;  %s654_s7 = sand.u32 1, %s932_s9  }
 0x2b8   : > { %p1230_p9 = scmp.ne.s32.totalorder %s1218_s16, 0  ;;  %s655_s14 = scalar_lea.sflag [#allocation6], %s654_s7 }
 0x2ba   : > { %p773_p1 = pnand %p779_p12, %p1230_p9 }
 0x2bc   : > { %p774_p2 = pneg %p773_p1 }
 0x2be   : > { %927 = dma.done.wait (%p774_p2), %s655_s14, 16  }
 0x2bf   : > { %929 = vsyncadd (%p774_p2), %s655_s14, 4294967280  ;;  %p16_p0 = scmp.ge.s32.totalorder %s1015_s20, 6   ;;  %s1231_s9 = smov %s936_s10 }
 0x2c0   : > { %s1232_s10 = smov %s940_s11  ;;  %s1233_s11 = smov %s1042_s28 }
 0x2c1   : > { %s1234_s12 = smov %s1015_s20  ;;  %18 = sbr.rel (!%p16_p0) target bundleno = 6 (0x6), region = 77 }
 0x2c6   :  { %659 = vsyncpa [#allocation5], 1 }
 0x2c7   :  { %661 = vsyncpa [#allocation5 + $0x1], 1 }
 0x2c8   :  { %662 = vsyncpa [#allocation8], 1 }
 0x2c9   :  { %663 = vsyncpa [#allocation6], 1 }
 0x2ca   :  { %665 = vsyncpa [#allocation6 + $0x1], 1 }

</bundles_post_ra>
